<compile_context>
chip_gen: v7x
topology: tpu7x:2x2x1
jax: 0.10.0
libtpu: 0.0.40
codegen_flags: <defaults>
</compile_context>

<pallas_src>
import jax
import jax.numpy as jnp
from jax.experimental import pallas as pl
from jax.experimental.pallas import tpu as pltpu


def _round_up(x: int, m: int) -> int:
    return (x + m - 1) // m * m


# -----------------------------------------------------------------------------
# Kernel
# -----------------------------------------------------------------------------
def mlp_head_kernel(x_ref, w1_ref, b1_ref, w2_ref, b2_ref, o_ref):
    # x_ref : (TM, D_pad)   bf16  activation tile (advances with the batch grid)
    # w1_ref: (D_pad, H_pad) bf16  resident across grid steps
    # b1_ref: (1, H_pad)     f32
    # w2_ref: (H_pad, O_pad) bf16  resident across grid steps
    # b2_ref: (1, O_pad)     f32
    # o_ref : (TM, O_pad)          lane-dense output tile
    h = jnp.dot(x_ref[...], w1_ref[...], preferred_element_type=jnp.float32)
    h = jnp.maximum(h + b1_ref[...], 0.0)          # f32 VPU epilogue (v5e-safe)
    y = jnp.dot(h.astype(jnp.bfloat16), w2_ref[...],
                preferred_element_type=jnp.float32)
    o_ref[...] = (y + b2_ref[...]).astype(o_ref.dtype)


# -----------------------------------------------------------------------------
# One-time parameter preparation (call at model-init time, NOT per forward).
# -----------------------------------------------------------------------------
def prepare_head_params(w1, b1, w2, b2):
    """Pad to 128-multiples and cast to bf16/f32 once; reuse across forwards."""
    D_in, H = w1.shape
    O = w2.shape[1]
    D_pad, H_pad, O_pad = (_round_up(d, 128) for d in (D_in, H, O))
    w1p = jnp.zeros((D_pad, H_pad), jnp.bfloat16).at[:D_in, :H].set(
        w1.astype(jnp.bfloat16))
    b1p = jnp.zeros((1, H_pad), jnp.float32).at[:, :H].set(
        b1.astype(jnp.float32).reshape(1, H))
    w2p = jnp.zeros((H_pad, O_pad), jnp.bfloat16).at[:H, :O].set(
        w2.astype(jnp.bfloat16))
    b2p = jnp.zeros((1, O_pad), jnp.float32).at[:, :O].set(
        b2.astype(jnp.float32).reshape(1, O))
    return {"w1p": w1p, "b1p": b1p, "w2p": w2p, "b2p": b2p,
            "in_features": D_in, "out_features": O}


# -----------------------------------------------------------------------------
# Forward wrapper
# -----------------------------------------------------------------------------
def mlp_head_forward(x, params, *, block_batch=512, out_dtype=jnp.float32):
    """x: [B, D_in] f32 feature rows; params: output of prepare_head_params."""
    B, D_in = x.shape
    assert D_in == params["in_features"]
    w1p, b1p, w2p, b2p = (params["w1p"], params["b1p"],
                          params["w2p"], params["b2p"])
    D_pad, H_pad = w1p.shape
    O_pad = w2p.shape[1]
    O = params["out_features"]

    # Activations: when D_in is already lane-aligned (resnet50 width 2048) only
    # cast to bf16 — no padded copy, no extra HBM pass.  Otherwise pad the
    # feature lanes only; the batch is never padded (ragged last grid block).
    if D_in == D_pad:
        xp = x.astype(jnp.bfloat16)
    else:
        xp = jnp.zeros((B, D_pad), jnp.bfloat16).at[:, :D_in].set(
            x.astype(jnp.bfloat16))

    # Batch tile: ~block_batch rows per step, rounded to the sublane multiple 8,
    # with >= 2 grid steps when the batch allows it so v7x's 2 TensorCores both
    # get work on the "parallel" batch axis.
    n_steps = max(1, pl.cdiv(B, block_batch))
    if n_steps < 2 and B > 8:
        n_steps = 2
    tm = _round_up(pl.cdiv(B, n_steps), 8)
    grid = (pl.cdiv(B, tm),)

    cost = pl.CostEstimate(
        flops=2 * B * (D_pad * H_pad + H_pad * O_pad),
        transcendentals=0,
        bytes_accessed=(xp.size * 2 + w1p.size * 2 + w2p.size * 2
                        + b1p.size * 4 + b2p.size * 4
                        + B * O_pad * jnp.dtype(out_dtype).itemsize),
    )

    def _run(single_buffer_weights):
        if single_buffer_weights:
            def const_spec(shape):
                # Constant block index -> single-buffered resident operand.
                return pl.BlockSpec(shape, lambda i: (0, 0),
                                    pipeline_mode=pl.Buffered(1))
        else:
            def const_spec(shape):
                return pl.BlockSpec(shape, lambda i: (0, 0))

        in_specs = [
            pl.BlockSpec((tm, D_pad), lambda i: (i, 0)),  # per-step x tile
            const_spec((D_pad, H_pad)),
            const_spec((1, H_pad)),
            const_spec((H_pad, O_pad)),
            const_spec((1, O_pad)),
        ]
        out_specs = pl.BlockSpec((tm, O_pad), lambda i: (i, 0))

        return pl.pallas_call(
            mlp_head_kernel,
            out_shape=jax.ShapeDtypeStruct((B, O_pad), out_dtype),
            grid_spec=pltpu.PrefetchScalarGridSpec(
                num_scalar_prefetch=0,
                grid=grid,
                in_specs=in_specs,
                out_specs=out_specs,
            ),
            compiler_params=pltpu.CompilerParams(
                dimension_semantics=("parallel",),
                vmem_limit_bytes=48 * 1024 * 1024,
            ),
            cost_estimate=cost,
        )(xp, w1p, b1p, w2p, b2p)

    if hasattr(pl, "Buffered"):
        try:
            out_padded = _run(True)
        except Exception:
            # pipeline_mode not supported by this JAX/Mosaic build; fall back
            # to default double-buffering (correct, slightly more VMEM).
            out_padded = _run(False)
    else:
        out_padded = _run(False)

    # Slice away output-lane padding (batch was never padded).
    return out_padded[:, :O]


# -----------------------------------------------------------------------------
# Demo / self-test
# -----------------------------------------------------------------------------
def init_params(key, input_dim, output_dim, w_range=0.01):
    assert output_dim < input_dim
    hidden = (input_dim + output_dim) // 2
    k1, k2, k3, k4 = jax.random.split(key, 4)
    # layer_1: PyTorch default Linear init ~ U(-1/sqrt(fan_in), 1/sqrt(fan_in))
    bound1 = 1.0 / (input_dim ** 0.5)
    w1 = jax.random.uniform(k1, (input_dim, hidden), jnp.float32, -bound1, bound1)
    b1 = jax.random.uniform(k2, (1, hidden), jnp.float32, -bound1, bound1)
    # MILPNet / NamedLinear head: weights bounded by w_range.
    w2 = jax.random.uniform(k3, (hidden, output_dim), jnp.float32, -w_range, w_range)
    b2 = jax.random.uniform(k4, (1, output_dim), jnp.float32, -w_range, w_range)
    return w1, b1, w2, b2


if __name__ == "__main__":
    key = jax.random.PRNGKey(0)
    kx, kp = jax.random.split(key)

    batch = 2
    input_dim = 32          # small stand-in for the resnet50 feature width (2048)
    output_dim = 8          # small stand-in for the 10-way logit head

    x = jax.random.normal(kx, (batch, input_dim), jnp.float32)
    w1, b1, w2, b2 = init_params(kp, input_dim, output_dim, w_range=0.1)

    # Pad + cast the head parameters ONCE (model-init time), then run forwards.
    params = prepare_head_params(w1, b1, w2, b2)
    out = mlp_head_forward(x, params)
    out = jax.block_until_ready(out)

    # Pure-JAX reference with the same bf16-operand / f32-accumulation math.
    xb, w1b, w2b = (x.astype(jnp.bfloat16), w1.astype(jnp.bfloat16),
                    w2.astype(jnp.bfloat16))
    ref_h = jnp.maximum(
        jnp.dot(xb, w1b, preferred_element_type=jnp.float32) + b1, 0.0)
    ref = jnp.dot(ref_h.astype(jnp.bfloat16), w2b,
                  preferred_element_type=jnp.float32) + b2

    assert out.shape == (batch, output_dim)
    assert jnp.allclose(out, ref, atol=2e-3, rtol=2e-3)

    print("KERNEL_OK")
</pallas_src>

<mosaic_0001>
module attributes {stable_mosaic.version = 11 : i64} {
  func.func @mlp_head_kernel(%arg0: i32, %arg1: memref<8x128xbf16, #tpu.memory_space<vmem>>, %arg2: memref<128x128xbf16, #tpu.memory_space<vmem>>, %arg3: memref<1x128xf32, #tpu.memory_space<vmem>>, %arg4: memref<128x128xbf16, #tpu.memory_space<vmem>>, %arg5: memref<1x128xf32, #tpu.memory_space<vmem>>, %arg6: memref<8x128xf32, #tpu.memory_space<vmem>>) attributes {dimension_semantics = [#tpu.dimension_semantics<parallel>], iteration_bounds = array<i64: 1>, scalar_prefetch = 0 : i64, scratch_operands = 0 : i64, tpu.core_type = #tpu.core_type<tc>, window_params = [{transform_indices = @transform_0, window_bounds = array<i64: 8, 128>}, {pipeline_mode = #tpu.pipeline_mode<synchronous>, transform_indices = @transform_1, window_bounds = array<i64: 128, 128>}, {pipeline_mode = #tpu.pipeline_mode<synchronous>, transform_indices = @transform_2, window_bounds = array<i64: 1, 128>}, {pipeline_mode = #tpu.pipeline_mode<synchronous>, transform_indices = @transform_3, window_bounds = array<i64: 128, 128>}, {pipeline_mode = #tpu.pipeline_mode<synchronous>, transform_indices = @transform_4, window_bounds = array<i64: 1, 128>}, {transform_indices = @transform_5, window_bounds = array<i64: 8, 128>}]} {
    %c0 = arith.constant 0 : index
    %c0_0 = arith.constant 0 : index
    %0 = vector.load %arg1[%c0, %c0_0] : memref<8x128xbf16, #tpu.memory_space<vmem>>, vector<8x128xbf16>
    %c0_1 = arith.constant 0 : index
    %c0_2 = arith.constant 0 : index
    %1 = vector.load %arg2[%c0_1, %c0_2] : memref<128x128xbf16, #tpu.memory_space<vmem>>, vector<128x128xbf16>
    %cst = arith.constant dense<0.000000e+00> : vector<8x128xf32>
    %2 = tpu.matmul %0, %1, %cst {dimension_numbers = #tpu.dot_dimension_numbers<[1], [0], [0], [1], [0, 0, 1, 1], [], []>} : vector<8x128xbf16>, vector<128x128xbf16>, vector<8x128xf32> -> vector<8x128xf32>
    %c0_3 = arith.constant 0 : index
    %c0_4 = arith.constant 0 : index
    %3 = vector.load %arg3[%c0_3, %c0_4] : memref<1x128xf32, #tpu.memory_space<vmem>>, vector<1x128xf32>
    %4 = vector.broadcast %3 : vector<1x128xf32> to vector<8x128xf32>
    %5 = arith.addf %2, %4 : vector<8x128xf32>
    %cst_5 = arith.constant 0.000000e+00 : f32
    %6 = vector.broadcast %cst_5 : f32 to vector<8x128xf32>
    %7 = arith.maximumf %5, %6 : vector<8x128xf32>
    %8 = arith.truncf %7 : vector<8x128xf32> to vector<8x128xbf16>
    %c0_6 = arith.constant 0 : index
    %c0_7 = arith.constant 0 : index
    %9 = vector.load %arg4[%c0_6, %c0_7] : memref<128x128xbf16, #tpu.memory_space<vmem>>, vector<128x128xbf16>
    %cst_8 = arith.constant dense<0.000000e+00> : vector<8x128xf32>
    %10 = tpu.matmul %8, %9, %cst_8 {dimension_numbers = #tpu.dot_dimension_numbers<[1], [0], [0], [1], [0, 0, 1, 1], [], []>} : vector<8x128xbf16>, vector<128x128xbf16>, vector<8x128xf32> -> vector<8x128xf32>
    %c0_9 = arith.constant 0 : index
    %c0_10 = arith.constant 0 : index
    %11 = vector.load %arg5[%c0_9, %c0_10] : memref<1x128xf32, #tpu.memory_space<vmem>>, vector<1x128xf32>
    %12 = vector.broadcast %11 : vector<1x128xf32> to vector<8x128xf32>
    %13 = arith.addf %10, %12 : vector<8x128xf32>
    %c0_11 = arith.constant 0 : index
    %c0_12 = arith.constant 0 : index
    %14 = vector.load %arg6[%c0_11, %c0_12] : memref<8x128xf32, #tpu.memory_space<vmem>>, vector<8x128xf32>
    tpu.vector_store %arg6[%c0_11, %c0_12], %13 {strides = array<i32>} : memref<8x128xf32, #tpu.memory_space<vmem>>, vector<8x128xf32>,
    return
  }
  func.func @transform_0(%arg0: i32) -> (i32, i32) {
    %c0_i32 = arith.constant 0 : i32
    %c0_i32_0 = arith.constant 0 : i32
    return %arg0, %c0_i32 : i32, i32
  }
  func.func @transform_1(%arg0: i32) -> (i32, i32) {
    %c0_i32 = arith.constant 0 : i32
    %c0_i32_0 = arith.constant 0 : i32
    %c0_i32_1 = arith.constant 0 : i32
    return %c0_i32, %c0_i32_0 : i32, i32
  }
  func.func @transform_2(%arg0: i32) -> (i32, i32) {
    %c0_i32 = arith.constant 0 : i32
    %c0_i32_0 = arith.constant 0 : i32
    %c0_i32_1 = arith.constant 0 : i32
    return %c0_i32, %c0_i32_0 : i32, i32
  }
  func.func @transform_3(%arg0: i32) -> (i32, i32) {
    %c0_i32 = arith.constant 0 : i32
    %c0_i32_0 = arith.constant 0 : i32
    %c0_i32_1 = arith.constant 0 : i32
    return %c0_i32, %c0_i32_0 : i32, i32
  }
  func.func @transform_4(%arg0: i32) -> (i32, i32) {
    %c0_i32 = arith.constant 0 : i32
    %c0_i32_0 = arith.constant 0 : i32
    %c0_i32_1 = arith.constant 0 : i32
    return %c0_i32, %c0_i32_0 : i32, i32
  }
  func.func @transform_5(%arg0: i32) -> (i32, i32) {
    %c0_i32 = arith.constant 0 : i32
    %c0_i32_0 = arith.constant 0 : i32
    return %arg0, %c0_i32 : i32, i32
  }
}

module attributes {stable_mosaic.version = 11 : i64} {
  func.func @mlp_head_kernel(%arg0: i32, %arg1: memref<8x128xbf16, #tpu.memory_space<vmem>>, %arg2: memref<128x128xbf16, #tpu.memory_space<vmem>>, %arg3: memref<1x128xf32, #tpu.memory_space<vmem>>, %arg4: memref<128x128xbf16, #tpu.memory_space<vmem>>, %arg5: memref<1x128xf32, #tpu.memory_space<vmem>>, %arg6: memref<8x128xf32, #tpu.memory_space<vmem>>) attributes {dimension_semantics = [#tpu.dimension_semantics<parallel>], iteration_bounds = array<i64: 1>, scalar_prefetch = 0 : i64, scratch_operands = 0 : i64, tpu.core_type = #tpu.core_type<tc>, window_params = [{transform_indices = @transform_0, window_bounds = array<i64: 8, 128>}, {pipeline_mode = #tpu.pipeline_mode<synchronous>, transform_indices = @transform_1, window_bounds = array<i64: 128, 128>}, {pipeline_mode = #tpu.pipeline_mode<synchronous>, transform_indices = @transform_2, window_bounds = array<i64: 1, 128>}, {pipeline_mode = #tpu.pipeline_mode<synchronous>, transform_indices = @transform_3, window_bounds = array<i64: 128, 128>}, {pipeline_mode = #tpu.pipeline_mode<synchronous>, transform_indices = @transform_4, window_bounds = array<i64: 1, 128>}, {transform_indices = @transform_5, window_bounds = array<i64: 8, 128>}]} {
    %c0 = arith.constant 0 : index
    %c0_0 = arith.constant 0 : index
    %0 = vector.load %arg1[%c0, %c0_0] : memref<8x128xbf16, #tpu.memory_space<vmem>>, vector<8x128xbf16>
    %c0_1 = arith.constant 0 : index
    %c0_2 = arith.constant 0 : index
    %1 = vector.load %arg2[%c0_1, %c0_2] : memref<128x128xbf16, #tpu.memory_space<vmem>>, vector<128x128xbf16>
    %cst = arith.constant dense<0.000000e+00> : vector<8x128xf32>
    %2 = tpu.matmul %0, %1, %cst {dimension_numbers = #tpu.dot_dimension_numbers<[1], [0], [0], [1], [0, 0, 1, 1], [], []>} : vector<8x128xbf16>, vector<128x128xbf16>, vector<8x128xf32> -> vector<8x128xf32>
    %c0_3 = arith.constant 0 : index
    %c0_4 = arith.constant 0 : index
    %3 = vector.load %arg3[%c0_3, %c0_4] : memref<1x128xf32, #tpu.memory_space<vmem>>, vector<1x128xf32>
    %4 = vector.broadcast %3 : vector<1x128xf32> to vector<8x128xf32>
    %5 = arith.addf %2, %4 : vector<8x128xf32>
    %cst_5 = arith.constant 0.000000e+00 : f32
    %6 = vector.broadcast %cst_5 : f32 to vector<8x128xf32>
    %7 = arith.maximumf %5, %6 : vector<8x128xf32>
    %8 = arith.truncf %7 : vector<8x128xf32> to vector<8x128xbf16>
    %c0_6 = arith.constant 0 : index
    %c0_7 = arith.constant 0 : index
    %9 = vector.load %arg4[%c0_6, %c0_7] : memref<128x128xbf16, #tpu.memory_space<vmem>>, vector<128x128xbf16>
    %cst_8 = arith.constant dense<0.000000e+00> : vector<8x128xf32>
    %10 = tpu.matmul %8, %9, %cst_8 {dimension_numbers = #tpu.dot_dimension_numbers<[1], [0], [0], [1], [0, 0, 1, 1], [], []>} : vector<8x128xbf16>, vector<128x128xbf16>, vector<8x128xf32> -> vector<8x128xf32>
    %c0_9 = arith.constant 0 : index
    %c0_10 = arith.constant 0 : index
    %11 = vector.load %arg5[%c0_9, %c0_10] : memref<1x128xf32, #tpu.memory_space<vmem>>, vector<1x128xf32>
    %12 = vector.broadcast %11 : vector<1x128xf32> to vector<8x128xf32>
    %13 = arith.addf %10, %12 : vector<8x128xf32>
    %c0_11 = arith.constant 0 : index
    %c0_12 = arith.constant 0 : index
    %14 = vector.load %arg6[%c0_11, %c0_12] : memref<8x128xf32, #tpu.memory_space<vmem>>, vector<8x128xf32>
    tpu.vector_store %arg6[%c0_11, %c0_12], %13 {strides = array<i32>} : memref<8x128xf32, #tpu.memory_space<vmem>>, vector<8x128xf32>,
    return
  }
  func.func @transform_0(%arg0: i32) -> (i32, i32) {
    %c0_i32 = arith.constant 0 : i32
    %c0_i32_0 = arith.constant 0 : i32
    return %arg0, %c0_i32 : i32, i32
  }
  func.func @transform_1(%arg0: i32) -> (i32, i32) {
    %c0_i32 = arith.constant 0 : i32
    %c0_i32_0 = arith.constant 0 : i32
    %c0_i32_1 = arith.constant 0 : i32
    return %c0_i32, %c0_i32_0 : i32, i32
  }
  func.func @transform_2(%arg0: i32) -> (i32, i32) {
    %c0_i32 = arith.constant 0 : i32
    %c0_i32_0 = arith.constant 0 : i32
    %c0_i32_1 = arith.constant 0 : i32
    return %c0_i32, %c0_i32_0 : i32, i32
  }
  func.func @transform_3(%arg0: i32) -> (i32, i32) {
    %c0_i32 = arith.constant 0 : i32
    %c0_i32_0 = arith.constant 0 : i32
    %c0_i32_1 = arith.constant 0 : i32
    return %c0_i32, %c0_i32_0 : i32, i32
  }
  func.func @transform_4(%arg0: i32) -> (i32, i32) {
    %c0_i32 = arith.constant 0 : i32
    %c0_i32_0 = arith.constant 0 : i32
    %c0_i32_1 = arith.constant 0 : i32
    return %c0_i32, %c0_i32_0 : i32, i32
  }
  func.func @transform_5(%arg0: i32) -> (i32, i32) {
    %c0_i32 = arith.constant 0 : i32
    %c0_i32_0 = arith.constant 0 : i32
    return %arg0, %c0_i32 : i32, i32
  }
}

</mosaic_0001>

<bundles_post_ra>
// kernel: tpu_custom_call.1
= control target key start
LH: loop header
LB: loop body
LE: loop exit
PB: predicated region body
PF: predicated region fallthrough
CT: control target
= control target key end

     0   :  { %10 = vsyncpa [#allocation3], 0  ;;  %s659_s0 = inlined_call_operand.hbm [shape: bf16[2,128], index: 0, kind: input, shape index: {}]   ;;  %s660_s1 = inlined_call_operand.hbm [shape: bf16[128,128], index: 1, kind: input, shape index: {}]   ;;  %s661_s2 = inlined_call_operand.vmem [shape: f32[1,128], index: 2, kind: input, shape index: {}]   ;;  %s662_s3 = inlined_call_operand.hbm [shape: bf16[128,128], index: 3, kind: input, shape index: {}]   ;;  %s663_s4 = inlined_call_operand.vmem [shape: f32[1,128], index: 4, kind: input, shape index: {}]   ;;  %s664_s5 = inlined_call_operand.hbm [shape: f32[2,128], index: 5, kind: output, shape index: {}]  }
   0x1   :  { %11 = vsyncpa [#allocation6], 0 }
   0x2   :  { %12 = vsyncpa [#allocation4], 0 }
   0x3   :  { %17 = vsyncadd [#allocation3], 48  ;;  %s538_s18 = smov [#allocation5]   ;;  %s444_s22 = scalar_lea.hbm %s660_s1, 1024 }
   0x4   :  { %s30_s19 = sshll.u32 %s538_s18, 4  ;;  %p445_p0 = scmp.ne.s32.totalorder %s660_s1, %s444_s22  ;;  %s31_s19 = int_to_ptr.vmem [resolvable:$true] %s30_s19 }
   0x5   :  { %p448_p1 = scmp.lt.u32.totalorder %s444_s22, %s660_s1 }
   0x7   :  { %p450_p2 = pnand %p448_p1, %p445_p0 }
   0x9   :  { %453 = shalt.err (!%p450_p2)
}
   0xa   :  { %s454_s27 = scalar_lea.vmem %s31_s19, 1024  ;;  %p459_p4 = scmp.lt.s32.totalorder %s31_s19, %s31_s19 }
   0xb   :  { %p455_p3 = scmp.ne.s32.totalorder %s31_s19, %s454_s27  ;;  %p460_p5 = scmp.lt.s32.totalorder %s454_s27, %s454_s27 }
   0xd   :  { %p461_p6 = por %p460_p5, %p459_p4 }
   0xf   :  { %p462_p7 = pnand %p461_p6, %p455_p3 }
  0x11   :  { %465 = shalt.err (!%p462_p7)
}
  0x12   :  { %s539_s28 = smov 64   ;;  %s540_s29 = smov 4  }
  0x13   :  { %36 = dma.hbm_to_vmem [thread:$0]  %s660_s1, 1024, %s31_s19, [#allocation6], %s539_s28, %s539_s28, %s540_s29  }
  0x14   :  { %s541_s7 = smov [#allocation2]   ;;  %s466_s11 = scalar_lea.hbm %s659_s0, 16 }
  0x15   :  { %s18_s8 = sshll.u32 %s541_s7, 4  ;;  %p467_p8 = scmp.ne.s32.totalorder %s659_s0, %s466_s11  ;;  %s19_s8 = int_to_ptr.vmem [resolvable:$true] %s18_s8 }
  0x16   :  { %p470_p9 = scmp.lt.u32.totalorder %s466_s11, %s659_s0 }
  0x18   :  { %p472_p10 = pnand %p470_p9, %p467_p8 }
  0x1a   :  { %475 = shalt.err (!%p472_p10)
}
  0x1b   :  { %s476_s16 = scalar_lea.vmem %s19_s8, 16  ;;  %s480_s1 = scalar_lea.vmem %s19_s8, 64 }
  0x1c   :  { %p477_p11 = scmp.ne.s32.totalorder %s19_s8, %s476_s16  ;;  %p481_p12 = scmp.lt.s32.totalorder %s19_s8, %s19_s8 }
  0x1d   :  { %p482_p13 = scmp.lt.s32.totalorder %s480_s1, %s476_s16 }
  0x1f   :  { %p483_p0 = por %p482_p13, %p481_p12 }
  0x21   :  { %p484_p1 = pnand %p483_p0, %p477_p11 }
  0x23   :  { %487 = shalt.err (!%p484_p1)
}
  0x24   :  { %s542_s17 = smov 16   ;;  %s543_s18 = smov 1  }
  0x25   :  { %24 = dma.hbm_to_vmem [thread:$0]  %s659_s0, 16, %s19_s8, [#allocation3], %s542_s17, %s542_s17, %s543_s18  }
  0x26   :  { %s544_s21 = smov [#allocation7]   ;;  %s488_s25 = scalar_lea.hbm %s662_s3, 1024 }
  0x27   :  { %s44_s22 = sshll.u32 %s544_s21, 4  ;;  %p489_p2 = scmp.ne.s32.totalorder %s662_s3, %s488_s25  ;;  %s45_s22 = int_to_ptr.vmem [resolvable:$true] %s44_s22 }
  0x28   :  { %p492_p3 = scmp.lt.u32.totalorder %s488_s25, %s662_s3 }
  0x2a   :  { %p494_p4 = pnand %p492_p3, %p489_p2 }
  0x2c   :  { %497 = shalt.err (!%p494_p4)
}
  0x2d   :  { %s498_s7 = scalar_lea.vmem %s45_s22, 1024  ;;  %p503_p6 = scmp.lt.s32.totalorder %s45_s22, %s45_s22 }
  0x2e   :  { %p499_p5 = scmp.ne.s32.totalorder %s45_s22, %s498_s7  ;;  %p504_p7 = scmp.lt.s32.totalorder %s498_s7, %s498_s7 }
  0x30   :  { %p505_p8 = por %p504_p7, %p503_p6 }
  0x32   :  { %p506_p9 = pnand %p505_p8, %p499_p5 }
  0x34   :  { %509 = shalt.err (!%p506_p9)
}
  0x35   :  { %50 = dma.hbm_to_vmem [thread:$0]  %s662_s3, 1024, %s45_s22, [#allocation6], %s539_s28, %s539_s28, %s540_s29  }
  0x36   :  { %532 = dma.done.wait [#allocation3], 64  }
  0x37   :  { %533 = vsyncadd [#allocation3], 4294967232 }
  0x38   :  { %534 = dma.done.wait [#allocation6], 2048  }
  0x39   :  { %535 = vsyncadd [#allocation6], 4294965248  ;;  %v545_v0 = vmov 0.0   ;;  %vm546_vm0 = vmmov 0   ;;  %v428_v1 = vld [vmem:[#allocation5] sm:$0xff]   ;;  %v429_v2 = vld [vmem:[#allocation5 + $0x8] sm:$0xff]   ;;  %v99_v4 = vlaneseq }
  0x3a   :  { %375 = vmatprep.subr.bf16.mxu0 %v545_v0  ;;  %391 = vmatprep.mubr.msk.bf16.mxu0 %vm546_vm0, %v545_v0  ;;  %v430_v3 = vld [vmem:[#allocation5 + $0x10] sm:$0xff]   ;;  %v431_v5 = vld [vmem:[#allocation5 + $0x18] sm:$0xff]   ;;  %v547_v6 = vmov 1966171168   ;;  %v436_v8 = vld [vmem:[#allocation7] sm:$0xff]  }
  0x3b   :  { %395 = vmatprep.subr.bf16.mxu1 %v545_v0  ;;  %411 = vmatprep.mubr.msk.bf16.mxu1 %vm546_vm0, %v545_v0  ;;  %v97_v7 = vunpack.c.l.s4 %v547_v6  ;;  %v432_v9 = vld [vmem:[#allocation5 + $0x20] sm:$0xff]   ;;  %v63_v10 = vld [vmem:[#allocation2] sm:$0x1]  ;;  %v64_v11 = vld [vmem:[#allocation2 + $0x1] sm:$0x1]  ;;  %v100_v12 = vshrl.u32 %v99_v4, 7 }
  0x3c   :  { %376 = vmatpush3.bf16.msra.mxu0 %v428_v1  ;;  %396 = vmatpush3.bf16.msra.mxu1 %v436_v8  ;;  %v437_v13 = vld [vmem:[#allocation7 + $0x8] sm:$0xff]   ;;  %v65_v14 = vld [vmem:[#allocation2 + $0x2] sm:$0x1]  ;;  %v66_v16 = vld [vmem:[#allocation2 + $0x3] sm:$0x1]  ;;  %v94_v18 = vcombine.low %v63_v10, %v64_v11 }
  0x3d   :  { %377 = vmatprep.subr.bf16.mxu0 %v545_v0  ;;  %v98_v15 = vunpack.c.0.s8 %v97_v7  ;;  %397 = vmatprep.subr.bf16.mxu1 %v545_v0  ;;  %v438_v17 = vld [vmem:[#allocation7 + $0x10] sm:$0xff]   ;;  %v95_v19 = vcombine.low %v65_v14, %v66_v16  ;;  %v433_v21 = vld [vmem:[#allocation5 + $0x28] sm:$0xff]   ;;  %v439_v22 = vld [vmem:[#allocation7 + $0x18] sm:$0xff]  }
  0x3e   :  { %v434_v25 = vld [vmem:[#allocation5 + $0x30] sm:$0xff]   ;;  %v440_v26 = vld [vmem:[#allocation7 + $0x20] sm:$0xff]   ;;  %v435_v28 = vld [vmem:[#allocation5 + $0x38] sm:$0xff]  }
  0x3f   :  { %v101_v20 = vsub.s32 %v98_v15, %v100_v12  ;;  %v441_v29 = vld [vmem:[#allocation7 + $0x28] sm:$0xff]   ;;  %v442_v31 = vld [vmem:[#allocation7 + $0x30] sm:$0xff]   ;;  %v443_v32 = vld [vmem:[#allocation7 + $0x38] sm:$0xff]  }
  0x40   :  { %378 = vmatpush3.bf16.msra.mxu0 %v429_v2  ;;  %398 = vmatpush3.bf16.msra.mxu1 %v437_v13  ;;  %v339_v33 = vld [vmem:[%s661_s2] ss:$0 sm:$0xff] }
  0x41   :  { %379 = vmatprep.subr.bf16.mxu0 %v545_v0  ;;  %399 = vmatprep.subr.bf16.mxu1 %v545_v0  ;;  %v102_v23 = vrot.slane %v94_v18, %v101_v20  ;;  %v109_v24 = vrot.slane %v95_v19, %v101_v20  ;;  %v348_v41 = vld [vmem:[%s663_s4] ss:$0 sm:$0xff] }
  0x43   :  { %v110_v27 = vcombine.low %v102_v23, %v109_v24 }
  0x44   :  { %380 = vmatpush3.bf16.msra.mxu0 %v430_v3  ;;  %400 = vmatpush3.bf16.msra.mxu1 %v438_v17 }
  0x45   :  { %381 = vmatprep.subr.bf16.mxu0 %v545_v0  ;;  %401 = vmatprep.subr.bf16.mxu1 %v545_v0  ;;  %v117_v30 = vrot.slane %v110_v27, %v101_v20 }
  0x48   :  { %382 = vmatpush3.bf16.msra.mxu0 %v431_v5  ;;  %402 = vmatpush3.bf16.msra.mxu1 %v439_v22 }
  0x49   :  { %383 = vmatprep.subr.bf16.mxu0 %v545_v0  ;;  %403 = vmatprep.subr.bf16.mxu1 %v545_v0 }
  0x4c   :  { %384 = vmatpush3.bf16.msra.mxu0 %v432_v9  ;;  %404 = vmatpush3.bf16.msra.mxu1 %v440_v26 }
  0x4d   :  { %385 = vmatprep.subr.bf16.mxu0 %v545_v0  ;;  %405 = vmatprep.subr.bf16.mxu1 %v545_v0 }
  0x50   :  { %386 = vmatpush3.bf16.msra.mxu0 %v433_v21  ;;  %406 = vmatpush3.bf16.msra.mxu1 %v441_v29 }
  0x51   :  { %387 = vmatprep.subr.bf16.mxu0 %v545_v0  ;;  %407 = vmatprep.subr.bf16.mxu1 %v545_v0 }
  0x54   :  { %388 = vmatpush3.bf16.msra.mxu0 %v434_v25  ;;  %408 = vmatpush3.bf16.msra.mxu1 %v442_v31 }
  0x55   :  { %389 = vmatprep.subr.bf16.mxu0 %v545_v0  ;;  %409 = vmatprep.subr.bf16.mxu1 %v545_v0 }
  0x58   :  { %390 = vmatpush3.bf16.msra.mxu0 %v435_v28  ;;  %410 = vmatpush3.bf16.msra.mxu1 %v443_v32 }
  0x5b   :  { %392 = vmatmul.mubr.bf16.vlgmr.msra.gmra.mrb[0].mxu0 %v117_v30 }
 0x12e   :  { %v201_v34 = vpop.f32.mrb[0].mxu0 }
 0x12f   :  { %v202_v35 = vadd.f32 %v339_v33, %v201_v34  ;;  %v393_v36 = vpop.f32.mrb[1].mxu0 }
 0x130   :  { %v204_v37 = vpop.f32.mrb[2].mxu0 }
 0x131   :  { %v207_v38 = vmax.f32 %v202_v35, 0.0  ;;  %v394_v39 = vpop.f32.mrb[3].mxu0 }
 0x133   :  { %v208_v40 = vpack.c.bf16 %v207_v38, %v207_v38 }
 0x135   :  { %412 = vmatmul.mubr.bf16.vlgmr.msra.gmra.mrb[0].mxu1 %v208_v40 }
 0x208   :  { %v314_v42 = vpop.f32.mrb[0].mxu1 }
 0x209   :  { %v315_v43 = vadd.f32 %v348_v41, %v314_v42  ;;  %v413_v44 = vpop.f32.mrb[1].mxu1 }
 0x20a   :  { %v317_v45 = vpop.f32.mrb[2].mxu1 }
 0x20b   :  { %320 = vst [vmem:[#allocation8] sm:$0xff] %v315_v43  ;;  %v414_v46 = vpop.f32.mrb[3].mxu1 }
 0x20c   :  { %325 = vsyncadd [#allocation4], 96  ;;  %s548_s2 = smov [#allocation8]  }
 0x20d   :  { %s326_s10 = sshll.u32 %s548_s2, 4  ;;  %s327_s10 = int_to_ptr.vmem [resolvable:$true] %s326_s10 }
 0x20e   :  { %s510_s11 = scalar_lea.vmem %s327_s10, 32  ;;  %s514_s12 = scalar_lea.vmem %s327_s10, 128 }
 0x20f   :  { %p511_p10 = scmp.ne.s32.totalorder %s327_s10, %s510_s11  ;;  %p515_p11 = scmp.lt.s32.totalorder %s327_s10, %s327_s10 }
 0x210   :  { %p516_p12 = scmp.lt.s32.totalorder %s514_s12, %s510_s11 }
 0x212   :  { %p517_p13 = por %p516_p12, %p515_p11 }
 0x214   :  { %p518_p0 = pnand %p517_p13, %p511_p10 }
 0x216   :  { %521 = shalt.err (!%p518_p0)
}
 0x217   :  { %s522_s14 = scalar_lea.hbm %s664_s5, 32 }
 0x218   :  { %p523_p1 = scmp.ne.s32.totalorder %s664_s5, %s522_s14  ;;  %p526_p2 = scmp.lt.u32.totalorder %s522_s14, %s664_s5 }
 0x21a   :  { %p528_p3 = pnand %p526_p2, %p523_p1 }
 0x21c   :  { %531 = shalt.err (!%p528_p3)
}
 0x21d   :  { %s549_s18 = smov 32   ;;  %s550_s19 = smov 2  }
 0x21e   :  { %332 = dma.vmem_to_hbm [thread:$0]  %s327_s10, 32, %s664_s5, [#allocation4], %s549_s18, %s549_s18, %s550_s19  }
 0x21f   :  { %536 = dma.done.wait [#allocation4], 128  }
 0x220   :  { %537 = vsyncadd [#allocation4], 4294967168 }
 0x221   :  { %336 = vsyncpa [#allocation3], 1 }
 0x222   :  { %337 = vsyncpa [#allocation6], 1 }
 0x223   :  { %338 = vsyncpa [#allocation4], 1 }

// kernel: tpu_custom_call.1
= control target key start
LH: loop header
LB: loop body
LE: loop exit
PB: predicated region body
PF: predicated region fallthrough
CT: control target
= control target key end

     0   :  { %10 = vsyncpa [#allocation3], 0  ;;  %s659_s0 = inlined_call_operand.hbm [shape: bf16[2,128], index: 0, kind: input, shape index: {}]   ;;  %s660_s1 = inlined_call_operand.hbm [shape: bf16[128,128], index: 1, kind: input, shape index: {}]   ;;  %s661_s2 = inlined_call_operand.vmem [shape: f32[1,128], index: 2, kind: input, shape index: {}]   ;;  %s662_s3 = inlined_call_operand.hbm [shape: bf16[128,128], index: 3, kind: input, shape index: {}]   ;;  %s663_s4 = inlined_call_operand.vmem [shape: f32[1,128], index: 4, kind: input, shape index: {}]   ;;  %s664_s5 = inlined_call_operand.hbm [shape: f32[2,128], index: 5, kind: output, shape index: {}]  }
   0x1   :  { %11 = vsyncpa [#allocation6], 0 }
   0x2   :  { %12 = vsyncpa [#allocation4], 0 }
   0x3   :  { %17 = vsyncadd [#allocation3], 48  ;;  %s538_s18 = smov [#allocation5]   ;;  %s444_s22 = scalar_lea.hbm %s660_s1, 1024 }
   0x4   :  { %s30_s19 = sshll.u32 %s538_s18, 4  ;;  %p445_p0 = scmp.ne.s32.totalorder %s660_s1, %s444_s22  ;;  %s31_s19 = int_to_ptr.vmem [resolvable:$true] %s30_s19 }
   0x5   :  { %p448_p1 = scmp.lt.u32.totalorder %s444_s22, %s660_s1 }
   0x7   :  { %p450_p2 = pnand %p448_p1, %p445_p0 }
   0x9   :  { %453 = shalt.err (!%p450_p2)
}
   0xa   :  { %s454_s27 = scalar_lea.vmem %s31_s19, 1024  ;;  %p459_p4 = scmp.lt.s32.totalorder %s31_s19, %s31_s19 }
   0xb   :  { %p455_p3 = scmp.ne.s32.totalorder %s31_s19, %s454_s27  ;;  %p460_p5 = scmp.lt.s32.totalorder %s454_s27, %s454_s27 }
   0xd   :  { %p461_p6 = por %p460_p5, %p459_p4 }
   0xf   :  { %p462_p7 = pnand %p461_p6, %p455_p3 }
  0x11   :  { %465 = shalt.err (!%p462_p7)
}
  0x12   :  { %s539_s28 = smov 64   ;;  %s540_s29 = smov 4  }
  0x13   :  { %36 = dma.hbm_to_vmem [thread:$0]  %s660_s1, 1024, %s31_s19, [#allocation6], %s539_s28, %s539_s28, %s540_s29  }
  0x14   :  { %s541_s7 = smov [#allocation2]   ;;  %s466_s11 = scalar_lea.hbm %s659_s0, 16 }
  0x15   :  { %s18_s8 = sshll.u32 %s541_s7, 4  ;;  %p467_p8 = scmp.ne.s32.totalorder %s659_s0, %s466_s11  ;;  %s19_s8 = int_to_ptr.vmem [resolvable:$true] %s18_s8 }
  0x16   :  { %p470_p9 = scmp.lt.u32.totalorder %s466_s11, %s659_s0 }
  0x18   :  { %p472_p10 = pnand %p470_p9, %p467_p8 }
  0x1a   :  { %475 = shalt.err (!%p472_p10)
}
  0x1b   :  { %s476_s16 = scalar_lea.vmem %s19_s8, 16  ;;  %s480_s1 = scalar_lea.vmem %s19_s8, 64 }
  0x1c   :  { %p477_p11 = scmp.ne.s32.totalorder %s19_s8, %s476_s16  ;;  %p481_p12 = scmp.lt.s32.totalorder %s19_s8, %s19_s8 }
  0x1d   :  { %p482_p13 = scmp.lt.s32.totalorder %s480_s1, %s476_s16 }
  0x1f   :  { %p483_p0 = por %p482_p13, %p481_p12 }
  0x21   :  { %p484_p1 = pnand %p483_p0, %p477_p11 }
  0x23   :  { %487 = shalt.err (!%p484_p1)
}
  0x24   :  { %s542_s17 = smov 16   ;;  %s543_s18 = smov 1  }
  0x25   :  { %24 = dma.hbm_to_vmem [thread:$0]  %s659_s0, 16, %s19_s8, [#allocation3], %s542_s17, %s542_s17, %s543_s18  }
  0x26   :  { %s544_s21 = smov [#allocation7]   ;;  %s488_s25 = scalar_lea.hbm %s662_s3, 1024 }
  0x27   :  { %s44_s22 = sshll.u32 %s544_s21, 4  ;;  %p489_p2 = scmp.ne.s32.totalorder %s662_s3, %s488_s25  ;;  %s45_s22 = int_to_ptr.vmem [resolvable:$true] %s44_s22 }
  0x28   :  { %p492_p3 = scmp.lt.u32.totalorder %s488_s25, %s662_s3 }
  0x2a   :  { %p494_p4 = pnand %p492_p3, %p489_p2 }
  0x2c   :  { %497 = shalt.err (!%p494_p4)
}
  0x2d   :  { %s498_s7 = scalar_lea.vmem %s45_s22, 1024  ;;  %p503_p6 = scmp.lt.s32.totalorder %s45_s22, %s45_s22 }
  0x2e   :  { %p499_p5 = scmp.ne.s32.totalorder %s45_s22, %s498_s7  ;;  %p504_p7 = scmp.lt.s32.totalorder %s498_s7, %s498_s7 }
  0x30   :  { %p505_p8 = por %p504_p7, %p503_p6 }
  0x32   :  { %p506_p9 = pnand %p505_p8, %p499_p5 }
  0x34   :  { %509 = shalt.err (!%p506_p9)
}
  0x35   :  { %50 = dma.hbm_to_vmem [thread:$0]  %s662_s3, 1024, %s45_s22, [#allocation6], %s539_s28, %s539_s28, %s540_s29  }
  0x36   :  { %532 = dma.done.wait [#allocation3], 64  }
  0x37   :  { %533 = vsyncadd [#allocation3], 4294967232 }
  0x38   :  { %534 = dma.done.wait [#allocation6], 2048  }
  0x39   :  { %535 = vsyncadd [#allocation6], 4294965248  ;;  %v545_v0 = vmov 0.0   ;;  %vm546_vm0 = vmmov 0   ;;  %v428_v1 = vld [vmem:[#allocation5] sm:$0xff]   ;;  %v429_v2 = vld [vmem:[#allocation5 + $0x8] sm:$0xff]   ;;  %v99_v4 = vlaneseq }
  0x3a   :  { %375 = vmatprep.subr.bf16.mxu0 %v545_v0  ;;  %391 = vmatprep.mubr.msk.bf16.mxu0 %vm546_vm0, %v545_v0  ;;  %v430_v3 = vld [vmem:[#allocation5 + $0x10] sm:$0xff]   ;;  %v431_v5 = vld [vmem:[#allocation5 + $0x18] sm:$0xff]   ;;  %v547_v6 = vmov 1966171168   ;;  %v436_v8 = vld [vmem:[#allocation7] sm:$0xff]  }
  0x3b   :  { %395 = vmatprep.subr.bf16.mxu1 %v545_v0  ;;  %411 = vmatprep.mubr.msk.bf16.mxu1 %vm546_vm0, %v545_v0  ;;  %v97_v7 = vunpack.c.l.s4 %v547_v6  ;;  %v432_v9 = vld [vmem:[#allocation5 + $0x20] sm:$0xff]   ;;  %v63_v10 = vld [vmem:[#allocation2] sm:$0x1]  ;;  %v64_v11 = vld [vmem:[#allocation2 + $0x1] sm:$0x1]  ;;  %v100_v12 = vshrl.u32 %v99_v4, 7 }
  0x3c   :  { %376 = vmatpush3.bf16.msra.mxu0 %v428_v1  ;;  %396 = vmatpush3.bf16.msra.mxu1 %v436_v8  ;;  %v437_v13 = vld [vmem:[#allocation7 + $0x8] sm:$0xff]   ;;  %v65_v14 = vld [vmem:[#allocation2 + $0x2] sm:$0x1]  ;;  %v66_v16 = vld [vmem:[#allocation2 + $0x3] sm:$0x1]  ;;  %v94_v18 = vcombine.low %v63_v10, %v64_v11 }
  0x3d   :  { %377 = vmatprep.subr.bf16.mxu0 %v545_v0  ;;  %v98_v15 = vunpack.c.0.s8 %v97_v7  ;;  %397 = vmatprep.subr.bf16.mxu1 %v545_v0  ;;  %v438_v17 = vld [vmem:[#allocation7 + $0x10] sm:$0xff]   ;;  %v95_v19 = vcombine.low %v65_v14, %v66_v16  ;;  %v433_v21 = vld [vmem:[#allocation5 + $0x28] sm:$0xff]   ;;  %v439_v22 = vld [vmem:[#allocation7 + $0x18] sm:$0xff]  }
  0x3e   :  { %v434_v25 = vld [vmem:[#allocation5 + $0x30] sm:$0xff]   ;;  %v440_v26 = vld [vmem:[#allocation7 + $0x20] sm:$0xff]   ;;  %v435_v28 = vld [vmem:[#allocation5 + $0x38] sm:$0xff]  }
  0x3f   :  { %v101_v20 = vsub.s32 %v98_v15, %v100_v12  ;;  %v441_v29 = vld [vmem:[#allocation7 + $0x28] sm:$0xff]   ;;  %v442_v31 = vld [vmem:[#allocation7 + $0x30] sm:$0xff]   ;;  %v443_v32 = vld [vmem:[#allocation7 + $0x38] sm:$0xff]  }
  0x40   :  { %378 = vmatpush3.bf16.msra.mxu0 %v429_v2  ;;  %398 = vmatpush3.bf16.msra.mxu1 %v437_v13  ;;  %v339_v33 = vld [vmem:[%s661_s2] ss:$0 sm:$0xff] }
  0x41   :  { %379 = vmatprep.subr.bf16.mxu0 %v545_v0  ;;  %399 = vmatprep.subr.bf16.mxu1 %v545_v0  ;;  %v102_v23 = vrot.slane %v94_v18, %v101_v20  ;;  %v109_v24 = vrot.slane %v95_v19, %v101_v20  ;;  %v348_v41 = vld [vmem:[%s663_s4] ss:$0 sm:$0xff] }
  0x43   :  { %v110_v27 = vcombine.low %v102_v23, %v109_v24 }
  0x44   :  { %380 = vmatpush3.bf16.msra.mxu0 %v430_v3  ;;  %400 = vmatpush3.bf16.msra.mxu1 %v438_v17 }
  0x45   :  { %381 = vmatprep.subr.bf16.mxu0 %v545_v0  ;;  %401 = vmatprep.subr.bf16.mxu1 %v545_v0  ;;  %v117_v30 = vrot.slane %v110_v27, %v101_v20 }
  0x48   :  { %382 = vmatpush3.bf16.msra.mxu0 %v431_v5  ;;  %402 = vmatpush3.bf16.msra.mxu1 %v439_v22 }
  0x49   :  { %383 = vmatprep.subr.bf16.mxu0 %v545_v0  ;;  %403 = vmatprep.subr.bf16.mxu1 %v545_v0 }
  0x4c   :  { %384 = vmatpush3.bf16.msra.mxu0 %v432_v9  ;;  %404 = vmatpush3.bf16.msra.mxu1 %v440_v26 }
  0x4d   :  { %385 = vmatprep.subr.bf16.mxu0 %v545_v0  ;;  %405 = vmatprep.subr.bf16.mxu1 %v545_v0 }
  0x50   :  { %386 = vmatpush3.bf16.msra.mxu0 %v433_v21  ;;  %406 = vmatpush3.bf16.msra.mxu1 %v441_v29 }
  0x51   :  { %387 = vmatprep.subr.bf16.mxu0 %v545_v0  ;;  %407 = vmatprep.subr.bf16.mxu1 %v545_v0 }
  0x54   :  { %388 = vmatpush3.bf16.msra.mxu0 %v434_v25  ;;  %408 = vmatpush3.bf16.msra.mxu1 %v442_v31 }
  0x55   :  { %389 = vmatprep.subr.bf16.mxu0 %v545_v0  ;;  %409 = vmatprep.subr.bf16.mxu1 %v545_v0 }
  0x58   :  { %390 = vmatpush3.bf16.msra.mxu0 %v435_v28  ;;  %410 = vmatpush3.bf16.msra.mxu1 %v443_v32 }
  0x5b   :  { %392 = vmatmul.mubr.bf16.vlgmr.msra.gmra.mrb[0].mxu0 %v117_v30 }
 0x12e   :  { %v201_v34 = vpop.f32.mrb[0].mxu0 }
 0x12f   :  { %v202_v35 = vadd.f32 %v339_v33, %v201_v34  ;;  %v393_v36 = vpop.f32.mrb[1].mxu0 }
 0x130   :  { %v204_v37 = vpop.f32.mrb[2].mxu0 }
 0x131   :  { %v207_v38 = vmax.f32 %v202_v35, 0.0  ;;  %v394_v39 = vpop.f32.mrb[3].mxu0 }
 0x133   :  { %v208_v40 = vpack.c.bf16 %v207_v38, %v207_v38 }
 0x135   :  { %412 = vmatmul.mubr.bf16.vlgmr.msra.gmra.mrb[0].mxu1 %v208_v40 }
 0x208   :  { %v314_v42 = vpop.f32.mrb[0].mxu1 }
 0x209   :  { %v315_v43 = vadd.f32 %v348_v41, %v314_v42  ;;  %v413_v44 = vpop.f32.mrb[1].mxu1 }
 0x20a   :  { %v317_v45 = vpop.f32.mrb[2].mxu1 }
 0x20b   :  { %320 = vst [vmem:[#allocation8] sm:$0xff] %v315_v43  ;;  %v414_v46 = vpop.f32.mrb[3].mxu1 }
 0x20c   :  { %325 = vsyncadd [#allocation4], 96  ;;  %s548_s2 = smov [#allocation8]  }
 0x20d   :  { %s326_s10 = sshll.u32 %s548_s2, 4  ;;  %s327_s10 = int_to_ptr.vmem [resolvable:$true] %s326_s10 }
 0x20e   :  { %s510_s11 = scalar_lea.vmem %s327_s10, 32  ;;  %s514_s12 = scalar_lea.vmem %s327_s10, 128 }
 0x20f   :  { %p511_p10 = scmp.ne.s32.totalorder %s327_s10, %s510_s11  ;;  %p515_p11 = scmp.lt.s32.totalorder %s327_s10, %s327_s10 }
 0x210   :  { %p516_p12 = scmp.lt.s32.totalorder %s514_s12, %s510_s11 }
 0x212   :  { %p517_p13 = por %p516_p12, %p515_p11 }
 0x214   :  { %p518_p0 = pnand %p517_p13, %p511_p10 }
 0x216   :  { %521 = shalt.err (!%p518_p0)
}
 0x217   :  { %s522_s14 = scalar_lea.hbm %s664_s5, 32 }
 0x218   :  { %p523_p1 = scmp.ne.s32.totalorder %s664_s5, %s522_s14  ;;  %p526_p2 = scmp.lt.u32.totalorder %s522_s14, %s664_s5 }
 0x21a   :  { %p528_p3 = pnand %p526_p2, %p523_p1 }
 0x21c   :  { %531 = shalt.err (!%p528_p3)
}
 0x21d   :  { %s549_s18 = smov 32   ;;  %s550_s19 = smov 2  }
 0x21e   :  { %332 = dma.vmem_to_hbm [thread:$0]  %s327_s10, 32, %s664_s5, [#allocation4], %s549_s18, %s549_s18, %s550_s19  }
 0x21f   :  { %536 = dma.done.wait [#allocation4], 128  }
 0x220   :  { %537 = vsyncadd [#allocation4], 4294967168 }
 0x221   :  { %336 = vsyncpa [#allocation3], 1 }
 0x222   :  { %337 = vsyncpa [#allocation6], 1 }
 0x223   :  { %338 = vsyncpa [#allocation4], 1 }

</bundles_post_ra>
